<compile_context>
chip_gen: v5e
topology: v5e:2x2
jax: 0.10.0
libtpu: 0.0.40
codegen_flags: <defaults>
</compile_context>

<pallas_src>
import functools
import math

import jax
import jax.numpy as jnp
from jax.experimental import pallas as pl
from jax.experimental.pallas import tpu as pltpu


def _round_up(x: int, m: int) -> int:
    return ((x + m - 1) // m) * m


def _flash_sdpa_kernel(q_ref, k_ref, v_ref, o_ref, m_scr, l_scr, acc_scr, *,
                       lk_actual, tk, needs_mask):
    # q_ref: (1, 1, TQ, Dk), k_ref: (1, 1, TK, Dk), v_ref: (1, 1, TK, Dv)
    # o_ref: (1, 1, TQ, Dv)
    # m_scr/l_scr: (TQ, 1) f32; acc_scr: (TQ, Dv) f32
    kv = pl.program_id(3)

    @pl.when(kv == 0)
    def _init():
        m_scr[...] = jnp.full_like(m_scr, -jnp.inf)
        l_scr[...] = jnp.zeros_like(l_scr)
        acc_scr[...] = jnp.zeros_like(acc_scr)

    q = q_ref[0, 0]  # (TQ, Dk) in input dtype, already pre-scaled by 1/temperature
    k = k_ref[0, 0]  # (TK, Dk)
    v = v_ref[0, 0]  # (TK, Dv)

    # scores (TQ, TK): contract over head_dim directly, no explicit k.T
    s = jax.lax.dot_general(
        q, k,
        dimension_numbers=(((1,), (1,)), ((), ())),
        preferred_element_type=jnp.float32,
    )

    if needs_mask:
        # Mask padded KV columns (global col index >= real Lk) to -inf.
        col = kv * tk + jax.lax.broadcasted_iota(jnp.int32, s.shape, 1)
        s = jnp.where(col < lk_actual, s, -jnp.inf)

    # Online (streaming) softmax update.
    m_prev = m_scr[...]
    m_new = jnp.maximum(m_prev, jnp.max(s, axis=-1, keepdims=True))
    alpha = jnp.exp(m_prev - m_new)          # rescale factor for old stats
    p = jnp.exp(s - m_new)                   # (TQ, TK) f32

    l_scr[...] = alpha * l_scr[...] + jnp.sum(p, axis=-1, keepdims=True)
    acc_scr[...] = alpha * acc_scr[...] + jnp.dot(
        p.astype(v.dtype), v, preferred_element_type=jnp.float32)
    m_scr[...] = m_new

    @pl.when(kv == pl.num_programs(3) - 1)
    def _finalize():
        # Normalize the (TQ, Dv) accumulator once (moved off the O(Lq*Lk) path).
        inv_l = pl.reciprocal(l_scr[...], approx=False)
        o_ref[0, 0] = (acc_scr[...] * inv_l).astype(o_ref.dtype)


def scaled_dot_product_attention(q, k, v, temperature, *,
                                 tq_target=128, tk_target=256):
    B, H, Lq, Dk = q.shape
    _, _, Lk, Dk_k = k.shape
    _, _, Lk_v, Dv = v.shape
    assert Dk_k == Dk and Lk_v == Lk

    # Fold 1/temperature into Q once, in the input dtype.
    q = q * jnp.asarray(1.0 / temperature, dtype=q.dtype)

    # Tile sizes: sublane-aligned (multiple of 8) or the full (small) extent.
    tq = min(tq_target, _round_up(Lq, 8))
    tk = min(tk_target, _round_up(Lk, 8))
    lq_pad = _round_up(Lq, tq)
    lk_pad = _round_up(Lk, tk)

    if lq_pad != Lq:
        q = jnp.pad(q, ((0, 0), (0, 0), (0, lq_pad - Lq), (0, 0)))
    if lk_pad != Lk:
        k = jnp.pad(k, ((0, 0), (0, 0), (0, lk_pad - Lk), (0, 0)))
        v = jnp.pad(v, ((0, 0), (0, 0), (0, lk_pad - Lk), (0, 0)))

    nq = lq_pad // tq
    nk = lk_pad // tk
    grid = (B, H, nq, nk)
    needs_mask = lk_pad != Lk

    kernel = functools.partial(
        _flash_sdpa_kernel, lk_actual=Lk, tk=tk, needs_mask=needs_mask)

    itemsize = q.dtype.itemsize
    cost = pl.CostEstimate(
        flops=2 * B * H * Lq * Lk * (Dk + Dv),
        transcendentals=B * H * Lq * Lk,
        bytes_accessed=(q.size + k.size + v.size + B * H * lq_pad * Dv) * itemsize,
    )

    out = pl.pallas_call(
        kernel,
        out_shape=jax.ShapeDtypeStruct((B, H, lq_pad, Dv), q.dtype),
        grid_spec=pltpu.PrefetchScalarGridSpec(
            num_scalar_prefetch=0,
            grid=grid,
            in_specs=[
                # Q tile depends only on (b, h, qi): stays resident across KV steps.
                pl.BlockSpec((1, 1, tq, Dk), lambda b, h, qi, kv: (b, h, qi, 0)),
                # K / V stream along the KV axis.
                pl.BlockSpec((1, 1, tk, Dk), lambda b, h, qi, kv: (b, h, kv, 0)),
                pl.BlockSpec((1, 1, tk, Dv), lambda b, h, qi, kv: (b, h, kv, 0)),
            ],
            # Output block is revisited across the KV axis (accumulator pattern).
            out_specs=pl.BlockSpec((1, 1, tq, Dv), lambda b, h, qi, kv: (b, h, qi, 0)),
            scratch_shapes=[
                pltpu.VMEM((tq, 1), jnp.float32),   # running max m
                pltpu.VMEM((tq, 1), jnp.float32),   # running sum l
                pltpu.VMEM((tq, Dv), jnp.float32),  # output accumulator
            ],
        ),
        compiler_params=pltpu.CompilerParams(
            dimension_semantics=("parallel", "parallel", "parallel", "arbitrary"),
            vmem_limit_bytes=32 * 1024 * 1024,
        ),
        cost_estimate=cost,
    )(q, k, v)

    if lq_pad != Lq:
        out = out[:, :, :Lq, :]
    return out


def _reference(q, k, v, temperature):
    scores = jnp.einsum("bhqd,bhkd->bhqk",
                        (q / temperature).astype(jnp.float32),
                        k.astype(jnp.float32))
    attn = jax.nn.softmax(scores, axis=-1)
    return jnp.einsum("bhqk,bhkd->bhqd", attn, v.astype(jnp.float32)).astype(q.dtype)


if __name__ == "__main__":
    key = jax.random.PRNGKey(0)

    # Primary small test (matches the module's 4-D inputs).
    B, H, L, D = 2, 4, 8, 32
    temperature = math.sqrt(D)
    kq, kk, kv_ = jax.random.split(key, 3)
    q = jax.random.normal(kq, (B, H, L, D), dtype=jnp.float32)
    k = jax.random.normal(kk, (B, H, L, D), dtype=jnp.float32)
    v = jax.random.normal(kv_, (B, H, L, D), dtype=jnp.float32)

    out = jax.block_until_ready(scaled_dot_product_attention(q, k, v, temperature))
    ref = _reference(q, k, v, temperature)
    assert out.shape == (B, H, L, D)
    assert jnp.allclose(out, ref, atol=1e-4, rtol=1e-4), "mismatch vs reference (small)"

    # Second test exercising multi-tile online softmax + KV padding/masking.
    B2, H2, Lq2, Lk2, D2 = 1, 2, 136, 260, 32
    temperature2 = math.sqrt(D2)
    k1, k2, k3 = jax.random.split(jax.random.PRNGKey(1), 3)
    q2 = jax.random.normal(k1, (B2, H2, Lq2, D2), dtype=jnp.float32)
    k2_ = jax.random.normal(k2, (B2, H2, Lk2, D2), dtype=jnp.float32)
    v2 = jax.random.normal(k3, (B2, H2, Lk2, D2), dtype=jnp.float32)

    out2 = jax.block_until_ready(scaled_dot_product_attention(q2, k2_, v2, temperature2))
    ref2 = _reference(q2, k2_, v2, temperature2)
    assert out2.shape == (B2, H2, Lq2, D2)
    assert jnp.allclose(out2, ref2, atol=1e-4, rtol=1e-4), "mismatch vs reference (tiled)"

    print("KERNEL_OK")
</pallas_src>

<mosaic_0001>
module attributes {stable_mosaic.version = 11 : i64} {
  func.func @_flash_sdpa_kernel(%arg0: i32, %arg1: i32, %arg2: i32, %arg3: i32, %arg4: memref<1x1x8x32xf32, #tpu.memory_space<vmem>>, %arg5: memref<1x1x8x32xf32, #tpu.memory_space<vmem>>, %arg6: memref<1x1x8x32xf32, #tpu.memory_space<vmem>>, %arg7: memref<1x1x8x32xf32, #tpu.memory_space<vmem>>, %arg8: memref<8x1xf32, #tpu.memory_space<vmem>>, %arg9: memref<8x1xf32, #tpu.memory_space<vmem>>, %arg10: memref<8x32xf32, #tpu.memory_space<vmem>>) attributes {dimension_semantics = [#tpu.dimension_semantics<parallel>, #tpu.dimension_semantics<parallel>, #tpu.dimension_semantics<parallel>, #tpu.dimension_semantics<arbitrary>], iteration_bounds = array<i64: 2, 4, 1, 1>, scalar_prefetch = 0 : i64, scratch_operands = 3 : i64, tpu.core_type = #tpu.core_type<tc>, window_params = [{transform_indices = @transform_0, window_bounds = array<i64: 1, 1, 8, 32>}, {transform_indices = @transform_1, window_bounds = array<i64: 1, 1, 8, 32>}, {transform_indices = @transform_2, window_bounds = array<i64: 1, 1, 8, 32>}, {transform_indices = @transform_3, window_bounds = array<i64: 1, 1, 8, 32>}]} {
    %c0_i32 = arith.constant 0 : i32
    %0 = arith.cmpi eq, %arg3, %c0_i32 : i32
    %1 = arith.extui %0 : i1 to i32
    %c0_i32_0 = arith.constant 0 : i32
    %2 = arith.cmpi ne, %1, %c0_i32_0 : i32
    scf.if %2 {
      %cst_29 = arith.constant 0xFF800000 : f32
      %35 = vector.broadcast %cst_29 : f32 to vector<8x1xf32>
      %c0_30 = arith.constant 0 : index
      %c0_31 = arith.constant 0 : index
      %36 = vector.load %arg8[%c0_30, %c0_31] : memref<8x1xf32, #tpu.memory_space<vmem>>, vector<8x1xf32>
      tpu.vector_store %arg8[%c0_30, %c0_31], %35 {strides = array<i32>} : memref<8x1xf32, #tpu.memory_space<vmem>>, vector<8x1xf32>,
      %cst_32 = arith.constant 0.000000e+00 : f32
      %37 = vector.broadcast %cst_32 : f32 to vector<8x1xf32>
      %c0_33 = arith.constant 0 : index
      %c0_34 = arith.constant 0 : index
      %38 = vector.load %arg9[%c0_33, %c0_34] : memref<8x1xf32, #tpu.memory_space<vmem>>, vector<8x1xf32>
      tpu.vector_store %arg9[%c0_33, %c0_34], %37 {strides = array<i32>} : memref<8x1xf32, #tpu.memory_space<vmem>>, vector<8x1xf32>,
      %cst_35 = arith.constant 0.000000e+00 : f32
      %39 = vector.broadcast %cst_35 : f32 to vector<8x32xf32>
      %c0_36 = arith.constant 0 : index
      %c0_37 = arith.constant 0 : index
      %40 = vector.load %arg10[%c0_36, %c0_37] : memref<8x32xf32, #tpu.memory_space<vmem>>, vector<8x32xf32>
      tpu.vector_store %arg10[%c0_36, %c0_37], %39 {strides = array<i32>} : memref<8x32xf32, #tpu.memory_space<vmem>>, vector<8x32xf32>,
    } else {
    }
    %c0 = arith.constant 0 : index
    %c0_1 = arith.constant 0 : index
    %c0_2 = arith.constant 0 : index
    %c0_3 = arith.constant 0 : index
    %3 = vector.load %arg4[%c0, %c0_1, %c0_2, %c0_3] : memref<1x1x8x32xf32, #tpu.memory_space<vmem>>, vector<1x1x8x32xf32>
    %4 = vector.shape_cast %3 : vector<1x1x8x32xf32> to vector<8x32xf32>
    %c0_4 = arith.constant 0 : index
    %c0_5 = arith.constant 0 : index
    %c0_6 = arith.constant 0 : index
    %c0_7 = arith.constant 0 : index
    %5 = vector.load %arg5[%c0_4, %c0_5, %c0_6, %c0_7] : memref<1x1x8x32xf32, #tpu.memory_space<vmem>>, vector<1x1x8x32xf32>
    %6 = vector.shape_cast %5 : vector<1x1x8x32xf32> to vector<8x32xf32>
    %c0_8 = arith.constant 0 : index
    %c0_9 = arith.constant 0 : index
    %c0_10 = arith.constant 0 : index
    %c0_11 = arith.constant 0 : index
    %7 = vector.load %arg6[%c0_8, %c0_9, %c0_10, %c0_11] : memref<1x1x8x32xf32, #tpu.memory_space<vmem>>, vector<1x1x8x32xf32>
    %8 = vector.shape_cast %7 : vector<1x1x8x32xf32> to vector<8x32xf32>
    %cst = arith.constant dense<0.000000e+00> : vector<8x8xf32>
    %9 = tpu.matmul %4, %6, %cst {dimension_numbers = #tpu.dot_dimension_numbers<[1], [1], [0], [0], [0, 0, 1, 0], [], []>} : vector<8x32xf32>, vector<8x32xf32>, vector<8x8xf32> -> vector<8x8xf32>
    %c0_12 = arith.constant 0 : index
    %c0_13 = arith.constant 0 : index
    %10 = vector.load %arg8[%c0_12, %c0_13] : memref<8x1xf32, #tpu.memory_space<vmem>>, vector<8x1xf32>
    %cst_14 = arith.constant dense<0xFF800000> : vector<8xf32>
    %11 = vector.multi_reduction <maximumf>, %9, %cst_14 [1] : vector<8x8xf32> to vector<8xf32>
    %12 = vector.shape_cast %11 : vector<8xf32> to vector<8x1xf32>
    %13 = arith.maximumf %10, %12 : vector<8x1xf32>
    %14 = arith.subf %10, %13 : vector<8x1xf32>
    %15 = math.exp %14 : vector<8x1xf32>
    %16 = vector.broadcast %13 : vector<8x1xf32> to vector<8x8xf32>
    %17 = arith.subf %9, %16 : vector<8x8xf32>
    %18 = math.exp %17 : vector<8x8xf32>
    %c0_15 = arith.constant 0 : index
    %c0_16 = arith.constant 0 : index
    %19 = vector.load %arg9[%c0_15, %c0_16] : memref<8x1xf32, #tpu.memory_space<vmem>>, vector<8x1xf32>
    %20 = arith.mulf %15, %19 : vector<8x1xf32>
    %cst_17 = arith.constant dense<0.000000e+00> : vector<8xf32>
    %21 = vector.multi_reduction <add>, %18, %cst_17 [1] : vector<8x8xf32> to vector<8xf32>
    %22 = vector.shape_cast %21 : vector<8xf32> to vector<8x1xf32>
    %23 = arith.addf %20, %22 : vector<8x1xf32>
    %c0_18 = arith.constant 0 : index
    %c0_19 = arith.constant 0 : index
    %24 = vector.load %arg9[%c0_18, %c0_19] : memref<8x1xf32, #tpu.memory_space<vmem>>, vector<8x1xf32>
    tpu.vector_store %arg9[%c0_18, %c0_19], %23 {strides = array<i32>} : memref<8x1xf32, #tpu.memory_space<vmem>>, vector<8x1xf32>,
    %c0_20 = arith.constant 0 : index
    %c0_21 = arith.constant 0 : index
    %25 = vector.load %arg10[%c0_20, %c0_21] : memref<8x32xf32, #tpu.memory_space<vmem>>, vector<8x32xf32>
    %26 = vector.broadcast %15 : vector<8x1xf32> to vector<8x32xf32>
    %27 = arith.mulf %26, %25 : vector<8x32xf32>
    %cst_22 = arith.constant dense<0.000000e+00> : vector<8x32xf32>
    %28 = tpu.matmul %18, %8, %cst_22 {dimension_numbers = #tpu.dot_dimension_numbers<[1], [0], [0], [1], [0, 0, 1, 1], [], []>} : vector<8x8xf32>, vector<8x32xf32>, vector<8x32xf32> -> vector<8x32xf32>
    %29 = arith.addf %27, %28 : vector<8x32xf32>
    %c0_23 = arith.constant 0 : index
    %c0_24 = arith.constant 0 : index
    %30 = vector.load %arg10[%c0_23, %c0_24] : memref<8x32xf32, #tpu.memory_space<vmem>>, vector<8x32xf32>
    tpu.vector_store %arg10[%c0_23, %c0_24], %29 {strides = array<i32>} : memref<8x32xf32, #tpu.memory_space<vmem>>, vector<8x32xf32>,
    %c0_25 = arith.constant 0 : index
    %c0_26 = arith.constant 0 : index
    %31 = vector.load %arg8[%c0_25, %c0_26] : memref<8x1xf32, #tpu.memory_space<vmem>>, vector<8x1xf32>
    tpu.vector_store %arg8[%c0_25, %c0_26], %13 {strides = array<i32>} : memref<8x1xf32, #tpu.memory_space<vmem>>, vector<8x1xf32>,
    %c0_i32_27 = arith.constant 0 : i32
    %32 = arith.cmpi eq, %arg3, %c0_i32_27 : i32
    %33 = arith.extui %32 : i1 to i32
    %c0_i32_28 = arith.constant 0 : i32
    %34 = arith.cmpi ne, %33, %c0_i32_28 : i32
    scf.if %34 {
      %c0_29 = arith.constant 0 : index
      %c0_30 = arith.constant 0 : index
      %35 = vector.load %arg9[%c0_29, %c0_30] : memref<8x1xf32, #tpu.memory_space<vmem>>, vector<8x1xf32>
      %36 = tpu.reciprocal %35 : vector<8x1xf32> -> vector<8x1xf32>
      %c0_31 = arith.constant 0 : index
      %c0_32 = arith.constant 0 : index
      %37 = vector.load %arg10[%c0_31, %c0_32] : memref<8x32xf32, #tpu.memory_space<vmem>>, vector<8x32xf32>
      %38 = vector.broadcast %36 : vector<8x1xf32> to vector<8x32xf32>
      %39 = arith.mulf %37, %38 : vector<8x32xf32>
      %c0_33 = arith.constant 0 : index
      %c0_34 = arith.constant 0 : index
      %c0_35 = arith.constant 0 : index
      %c0_36 = arith.constant 0 : index
      %40 = vector.load %arg7[%c0_33, %c0_34, %c0_35, %c0_36] : memref<1x1x8x32xf32, #tpu.memory_space<vmem>>, vector<1x1x8x32xf32>
      %41 = vector.shape_cast %40 : vector<1x1x8x32xf32> to vector<8x32xf32>
      %42 = vector.shape_cast %39 : vector<8x32xf32> to vector<1x1x8x32xf32>
      tpu.vector_store %arg7[%c0_33, %c0_34, %c0_35, %c0_36], %42 {strides = array<i32>} : memref<1x1x8x32xf32, #tpu.memory_space<vmem>>, vector<1x1x8x32xf32>,
    } else {
    }
    return
  }
  func.func @transform_0(%arg0: i32, %arg1: i32, %arg2: i32, %arg3: i32) -> (i32, i32, i32, i32) {
    %c0_i32 = arith.constant 0 : i32
    %c0_i32_0 = arith.constant 0 : i32
    return %arg0, %arg1, %arg2, %c0_i32 : i32, i32, i32, i32
  }
  func.func @transform_1(%arg0: i32, %arg1: i32, %arg2: i32, %arg3: i32) -> (i32, i32, i32, i32) {
    %c0_i32 = arith.constant 0 : i32
    %c0_i32_0 = arith.constant 0 : i32
    return %arg0, %arg1, %arg3, %c0_i32 : i32, i32, i32, i32
  }
  func.func @transform_2(%arg0: i32, %arg1: i32, %arg2: i32, %arg3: i32) -> (i32, i32, i32, i32) {
    %c0_i32 = arith.constant 0 : i32
    %c0_i32_0 = arith.constant 0 : i32
    return %arg0, %arg1, %arg3, %c0_i32 : i32, i32, i32, i32
  }
  func.func @transform_3(%arg0: i32, %arg1: i32, %arg2: i32, %arg3: i32) -> (i32, i32, i32, i32) {
    %c0_i32 = arith.constant 0 : i32
    %c0_i32_0 = arith.constant 0 : i32
    return %arg0, %arg1, %arg2, %c0_i32 : i32, i32, i32, i32
  }
}

</mosaic_0001>

<bundles_post_ra>
// kernel: tpu_custom_call.1
= control target key start
LH: loop header
LB: loop body
LE: loop exit
PB: predicated region body
PF: predicated region fallthrough
CT: control target
= control target key end

     0   :  { %s1133_s0 = inlined_call_operand.hbm [shape: f32[2,4,8,32], index: 0, kind: input, shape index: {}]   ;;  %s1134_s1 = inlined_call_operand.hbm [shape: f32[2,4,8,32], index: 1, kind: input, shape index: {}]   ;;  %s1135_s2 = inlined_call_operand.hbm [shape: f32[2,4,8,32], index: 2, kind: input, shape index: {}]   ;;  %s1136_s3 = inlined_call_operand.hbm [shape: f32[2,4,8,32], index: 3, kind: output, shape index: {}]  }
   0x1   :  { %1142 = sst [smem:[#allocation21_spill]] %s1134_s1 }
   0x2   :  { %8 = vsyncpa [#allocation6], 0 }
   0x3   :  { %10 = vsyncpa [#allocation6 + $0x1], 0 }
   0x4   :  { %11 = vsyncpa [#allocation9], 0 }
   0x5   :  { %13 = vsyncpa [#allocation9 + $0x1], 0 }
   0x6   :  { %14 = vsyncpa [#allocation7], 0 }
   0x7   :  { %16 = vsyncpa [#allocation7 + $0x1], 0  ;;  %s941_s12 = smov 0   ;;  %s943_s13 = smov 0  }
   0x8   :  { %s945_s14 = smov 0   ;;  %s947_s15 = smov 0  }
   0x9   :  { %s949_s16 = smov 0   ;;  %s951_s17 = smov 0  }
   0xa   :  { %s953_s18 = smov 0   ;;  %s955_s19 = smov 0  }
   0xb LB: > { %1143 = sst [smem:[#allocation15_spill]] %s896_s14  ;;  %s982_s20 = sadd.s32 4294967295, %s916_s19   ;;  %s916_s19 = sphi %s955_s19, %s22_s19   ;;  %s912_s18 = sphi %s953_s18, %s1161_s18   ;;  %s908_s17 = sphi %s951_s17, %s1165_s17   ;;  %s904_s16 = sphi %s949_s16, %s1159_s16   ;;  %s900_s15 = sphi %s947_s15, %s1158_s15   ;;  %s896_s14 = sphi %s945_s14, %s1164_s14   ;;  %s892_s13 = sphi %s943_s13, %s1163_s13   ;;  %s888_s12 = sphi %s941_s12, %s1162_s12  }
   0xc   : > { %1144 = sst [smem:[#allocation16_spill]] %s908_s17  ;;  %s599_s21 = sadd.s32 4294967294, %s916_s19  }
   0xd   : > { %1145 = sst [smem:[#allocation17_spill]] %s912_s18  ;;  %s44_s22 = sadd.s32 1, %s908_s17 }
   0xe   : > { %s48_s23 = sadd.s32 1, %s912_s18  ;;  %p46_p0 = scmp.ge.s32.totalorder %s44_s22, 4 }
   0xf   : > { %s59_s24 = sadd.s32 1, %s896_s14  ;;  %p66_p1 = scmp.ne.s32.totalorder %s896_s14, %s892_s13 }
  0x10   : > { %p67_p2 = scmp.eq.s32.totalorder %s916_s19, 0  ;;  %s1167_s22 = smov (%p46_p0, %s44_s22), 0 }
  0x11   : > { %1146 = sst [smem:[#allocation18_spill]] %s1167_s22  ;;  %s1169_s23 = smov (!%p46_p0, %s48_s23), %s912_s18 }
  0x12   : > { %s53_s25 = ssub.s32 %s908_s17, %s1167_s22  ;;  %p996_p3 = por %p67_p2, %p66_p1 }
  0x13   : > { %p50_p4 = scmp.ge.s32.totalorder %s1169_s23, 2  ;;  %p72_p5 = scmp.ne.s32.totalorder %s892_s13, %s888_s12 }
  0x14   : > { %p73_p6 = scmp.eq.s32.totalorder %s982_s20, 0  ;;  %p160_p7 = scmp.eq.s32.totalorder %s982_s20, 7 }
  0x15   : > { %s1171_s23 = smov (%p50_p4, %s1169_s23), 0  ;;  %p166_p10 = scmp.eq.s32.totalorder %s599_s21, 7 }
  0x16   : > { %1148 = sst [smem:[#allocation19_spill]] %s1171_s23  ;;  %p1006_p8 = por %p73_p6, %p72_p5 }
  0x17   : > { %p1010_p9 = por %p160_p7, %p66_p1  ;;  %s52_s29 = ssub.s32 %s912_s18, %s1171_s23 }
  0x18   : > { %s54_s30 = sor.u32 %s53_s25, %s52_s29  ;;  %p1016_p12 = por %p166_p10, %p72_p5 }
  0x19   : > { %p57_p11 = scmp.eq.s32.totalorder %s54_s30, 0  ;;  %p646_p13 = scmp.lt.s32.totalorder %s916_s19, 8 }
  0x1a   : > { %s186_s5 = sand.u32 1, %s896_s14   ;;  %s603_s8 = sshll.u32 %s912_s18, 2 }
  0x1b   : > { %s1023_s6 = scalar_select %p57_p11, %s896_s14, %s59_s24  }
  0x1c   : > { %s602_s7 = sshll.u32 %s186_s5, 3  ;;  %s195_s9 = sadd.s32 %s908_s17, %s603_s8 }
  0x1d   : > { %1152 = sst [smem:[#allocation20_spill]] %s1023_s6  ;;  %p1029_p0 = pnand %p646_p13, %p996_p3 }
  0x1e   : > { %s604_s11 = sshll.u32 %s195_s9, 3  ;;  %s208_s21 = sand.u32 1, %s916_s19  }
  0x1f   : > { %s1154_s1 = sld [smem:[#allocation21_spill]]  ;;  %s212_s22 = scalar_lea.vmem [#allocation8], %s602_s7 }
  0x20   : > { %s223_s24 = sshll.u32 %s212_s22, 4  ;;  %s209_s18 = scalar_lea.sflag [#allocation9], %s208_s21  ;;  %s224_s24 = int_to_ptr.vmem [resolvable:$true] %s223_s24 }
  0x21   : > { %p611_p1 = scmp.ge.s32.totalorder %s916_s19, 1  ;;  %p250_p2 = scmp.lt.s32.totalorder %s916_s19, 9 }
  0x22   : > { %s197_s25 = scalar_lea.hbm %s1133_s0, %s604_s11  ;;  %s187_s22 = scalar_lea.sflag [#allocation6], %s186_s5 }
  0x23   : > { %p1041_p3 = pnand %p611_p1, %p250_p2  ;;  %s199_s29 = sshll.u32 %s197_s25, 4  ;;  %s200_s29 = int_to_ptr.hbm [resolvable:$true] %s199_s29 }
  0x24   : > { %s234_s6 = scalar_lea.vmem [#allocation10], %s602_s7  ;;  %s1058_s8 = sand.u32 (!%p1041_p3), 1, %s892_s13  }
  0x25   : > { %s219_s30 = scalar_lea.hbm %s1154_s1, %s604_s11  ;;  %s245_s14 = sshll.u32 %s234_s6, 4  ;;  %s246_s14 = int_to_ptr.vmem [resolvable:$true] %s245_s14 }
  0x26   : > { %s221_s23 = sshll.u32 %s219_s30, 4  ;;  %s190_s30 = scalar_lea.vmem [#allocation5], %s602_s7  ;;  %s222_s23 = int_to_ptr.hbm [resolvable:$true] %s221_s23 }
  0x27   : > { %638 = dma.hbm_to_vmem [thread:$0]  (!%p1029_p0), %s222_s23, 128, %s224_s24, %s209_s18  }
  0x28   : > { %s201_s1 = sshll.u32 %s190_s30, 4  ;;  %s241_s24 = scalar_lea.hbm %s1135_s2, %s604_s11  ;;  %s202_s1 = int_to_ptr.vmem [resolvable:$true] %s201_s1 }
  0x29   : > { %635 = dma.hbm_to_vmem [thread:$0]  (!%p1029_p0), %s200_s29, 128, %s202_s1, %s187_s22  }
  0x2a   : > { %s243_s17 = sshll.u32 %s241_s24, 4  ;;  %254 = sbr.rel (%p1041_p3) target bundleno = 666 (0x29a), region = 32  ;;  %s244_s17 = int_to_ptr.hbm [resolvable:$true] %s243_s17 }
  0x2b   : > { %641 = dma.hbm_to_vmem [thread:$0]  (!%p1029_p0), %s244_s17, 128, %s246_s14, %s209_s18  }
  0x2c   : > { %s1061_s1 = sshll.u32 (!%p1041_p3), %s1058_s8, 3  ;;  %s257_s5 = scalar_lea.sflag (!%p1041_p3), [#allocation6], %s1058_s8 }
  0x2d   : > { %s260_s11 = scalar_lea.vmem (!%p1041_p3), [#allocation5], %s1061_s1 }
  0x2f   : > { %875 = dma.done.wait (%p1006_p8), %s257_s5, 128  }
  0x30   : > { %877 = vsyncadd (%p1006_p8), %s257_s5, 4294967168  ;;  %s266_s14 = sand.u32 1, %s982_s20   ;;  %s270_s18 = scalar_lea.vmem [#allocation8], %s1061_s1 }
  0x31   : > { %s267_s17 = scalar_lea.sflag [#allocation9], %s266_s14 }
  0x32   : > { %879 = dma.done.wait (%p1006_p8), %s267_s17, 256  }
  0x33   : > { %881 = vsyncadd (%p1006_p8), %s267_s17, 4294967040  ;;  %vm321_vm0 = vcmask 261120   ;;  %v918_v0 = vmov 0.0   ;;  %v324_v1 = vld [vmem:[%s270_s18] sm:$0xff]  ;;  %v323_v2 = vld [vmem:[%s260_s11] sm:$0xff]  ;;  %vm318_vm1 = vcmask 7168  }
  0x34   : > { %322 = vst.msk [vmem:[#allocation4] sm:$0xff] %vm321_vm0, %v918_v0  ;;  %616 = vmatpush.xpose.msk.msra.mxu0 %vm321_vm0, %v324_v1  ;;  %v919_v3 = vmov -inf   ;;  %vm354_vm2 = vcmask 64512   ;;  %v920_v6 = vmov 0   ;;  %s280_s20 = scalar_lea.vmem [#allocation10], %s1061_s1  ;;  %s620_s27 = sshll.u32 %s904_s16, 2 }
  0x35   : > { %319 = vst.msk [vmem:[#allocation2] sm:$0xff] %vm318_vm1, %v919_v3  ;;  %715 = vset.pattern.permute.xlu0 %v920_v6  ;;  %716 = vset.pattern.permute.xlu1 %v920_v6  ;;  %v325_v11 = vld [vmem:[%s280_s20] sm:$0xff]  ;;  %s449_s6 = sadd.s32 %s900_s15, %s620_s27  ;;  %s313_s25 = scalar_lea.vmem [#allocation11], %s1061_s1 }
  0x36   : > { %320 = vst.msk [vmem:[#allocation3] sm:$0xff] %vm318_vm1, %v918_v0  ;;  %717 = vset.pattern.permute.xlu2 %v920_v6  ;;  %403 = vmatpush.msra.mxu1 %v325_v11  ;;  %s621_s7 = sshll.u32 %s449_s6, 3  ;;  %s453_s29 = sshll.u32 %s313_s25, 4  ;;  %s454_s29 = int_to_ptr.vmem [resolvable:$true] %s453_s29 }
  0x37   : > { %617 = vmatmul.msk.f32.vlgmr.msra.gmra.mxu0 %vm321_vm0, %v323_v2  ;;  %s451_s9 = scalar_lea.hbm %s1136_s3, %s621_s7  ;;  %s438_s22 = scalar_lea.sflag [#allocation7], %s1058_s8 }
  0x38   : > { %s455_s30 = sshll.u32 %s451_s9, 4  ;;  %s834_s24 = scalar_lea.hbm %s1136_s3, 64  ;;  %s456_s30 = int_to_ptr.hbm [resolvable:$true] %s455_s30 }
  0x39   : > { %s828_s23 = sshra.s32 %s456_s30, 4  ;;  %s829_s23 = int_to_ptr.hbm [resolvable:$true] %s828_s23 }
  0x3a   : > { %s830_s15 = scalar_lea.hbm %s829_s23, 8  ;;  %p835_p7 = scmp.lt.s32.totalorder %s829_s23, %s1136_s3 }
  0x3b   : > { %v378_v28 = vld [vmem:[#allocation4] sm:$0xff]  ;;  %p831_p4 = scmp.ne.s32.totalorder %s829_s23, %s830_s15  ;;  %p836_p8 = scmp.lt.s32.totalorder %s834_s24, %s830_s15 }
  0x3c   : > { %v353_v7 = vld [vmem:[#allocation2] sm:$0xff] }
  0x3d   : > { %v370_v19 = vld [vmem:[#allocation3] sm:$0xff]  ;;  %p832_p5 = pnand %p831_p4, %p1010_p9  ;;  %p837_p10 = por %p836_p8, %p835_p7 }
  0x3f   : > { %p833_p6 = pneg %p832_p5 }
  0x41   : > { %p838_p11 = pnand %p837_p10, %p833_p6 }
  0xb4   : > { %v350_v4 = vpop.f32.mrf.mxu0 }
  0xb5   : > { %v355_v5 = vsel %vm354_vm2, %v350_v4, -inf }
  0xb6   : > { %356 = vmax.xlane.f32.xlu0 %v355_v5 }
 0x129   : > { %v357_v8 = vpop.xlane.xlu0 %356 }
 0x12a   : > { %v358_v9 = vmax.f32 %v353_v7, %v357_v8 }
 0x12c   : > { %v359_v10 = vsub.f32 %v353_v7, %v358_v9  ;;  %410 = vst.msk [vmem:[#allocation2] sm:$0xff] %vm318_vm1, %v358_v9  ;;  %364 = vperm.xlu0 %715, %v358_v9  }
 0x12e   : > { %v360_v17 = vmul.f32 1.442695, %v359_v10 }
 0x19e   : > { %v365_v12 = vpop.permute.xlu0 %364 }
 0x19f   : > { %v367_v13 = vsub.f32 %v350_v4, %v365_v12 }
 0x1a1   : > { %v368_v14 = vmul.f32 1.442695, %v367_v13 }
 0x1a3   : > { %718 = vpow2.f32 %v368_v14 }
 0x1a4   : > { %720 = vpow2.f32 %v360_v17 }
 0x1a9   : > { %v719_v15 = vpop.eup %718 }
 0x1aa   : > { %618 = vmatmul.msk.f32.vlgmr.msra.gmra.mxu1 %vm354_vm2, %v719_v15  ;;  %v372_v16 = vsel %vm354_vm2, %v719_v15, 0.0  ;;  %v721_v18 = vpop.eup %720 }
 0x1ab   : > { %373 = vadd.xlane.f32.xlu1 %v372_v16  ;;  %v371_v20 = vmul.f32 %v721_v18, %v370_v19 }
 0x1c4   : > { %381 = vperm.xlu1 %716, %v721_v18  }
 0x21e   : > { %v374_v21 = vpop.xlane.xlu1 %373 }
 0x21f   : > { %v375_v22 = vadd.f32 %v374_v21, %v371_v20 }
 0x221   : > { %377 = vst.msk [vmem:[#allocation3] sm:$0xff] %vm318_vm1, %v375_v22 }
 0x227   : > { %v405_v35 = vpop.f32.mrf.mxu1 }
 0x228   : > { %v414_v23 = vld [vmem:[#allocation3] sm:$0xff] }
 0x229   : > { %722 = vrcp.f32 %v414_v23  ;;  %v426_v27 = vand.u32 2147483648, %v414_v23  ;;  %v424_v30 = vand.u32 2147483647, %v414_v23  ;;  %vm420_vm4 = vweird.f32 %v414_v23 }
 0x22b   : > { %v427_v34 = vor.u32 1.1754944e-38, %v426_v27  ;;  %vm425_vm6 = vcmp.eq.f32.partialorder %v424_v30, 8.507059e+37 }
 0x22f   : > { %v723_v24 = vpop.eup %722 }
 0x230   : > { %v416_v25 = vmul.f32 %v723_v24, %v414_v23  ;;  %vm421_vm3 = vweird.f32 %v723_v24 }
 0x231   : > { %vm422_vm5 = vmor %vm420_vm4, %vm421_vm3 }
 0x232   : > { %v417_v26 = vsub.f32 1.0, %v416_v25 }
 0x234   : > { %v418_v29 = vmul.f32 %v723_v24, %v417_v26 }
 0x236   : > { %v382_v31 = vpop.permute.xlu1 %381  ;;  %v419_v32 = vadd.f32 %v723_v24, %v418_v29 }
 0x237   : > { %v384_v33 = vmul.f32 %v382_v31, %v378_v28 }
 0x238   : > { %v423_v36 = vsel %vm422_vm5, %v723_v24, %v419_v32 }
 0x239   : > { %v408_v37 = vadd.f32 %v405_v35, %v384_v33  ;;  %v428_v38 = vsel %vm425_vm6, %v427_v34, %v423_v36 }
 0x23a   : > { %432 = vperm.xlu2 %717, %v428_v38  }
 0x23b   : > { %409 = vst.msk [vmem:[#allocation4] sm:$0xff] %vm321_vm0, %v408_v37 }
 0x242   : > { %v429_v39 = vld [vmem:[#allocation4] sm:$0xff] }
 0x294   : > { %v433_v40 = vpop.permute.xlu2 %432 }
 0x295   : > { %v435_v41 = vmul.f32 %v433_v40, %v429_v39 }
 0x297   : > { %436 = vst.msk [vmem:[%s313_s25] sm:$0xff] %vm321_vm0, %v435_v41 }
 0x298   : > { %841 = shalt.err (!%p838_p11)
}
 0x299   : > { %630 = dma.vmem_to_hbm [thread:$0]  (%p1010_p9), %s454_s29, 128, %s456_s30, %s438_s22  }
 0x29a PF: > { %p647_p13 = scmp.ge.s32.totalorder %s916_s19, 2  ;;  %s467_s8 = sand.u32 1, %s888_s12  }
 0x29b   : > { %s468_s11 = scalar_lea.sflag [#allocation7], %s467_s8 }
 0x29c   : > { %p643_p0 = pnand %p647_p13, %p1016_p12 }
 0x29e   : > { %p644_p1 = pneg %p643_p0 }
 0x2a0   : > { %883 = dma.done.wait (%p644_p1), %s468_s11, 128  }
 0x2a1   : > { %885 = vsyncadd (%p644_p1), %s468_s11, 4294967168  ;;  %s22_s19 = sadd.s32 1, %s916_s19   ;;  %s1156_s14 = sld [smem:[#allocation15_spill]] }
 0x2a2   : > { %p19_p2 = scmp.ge.s32.totalorder %s22_s19, 10   ;;  %s1157_s17 = sld [smem:[#allocation20_spill]] }
 0x2a3   : > { %s1158_s15 = sld [smem:[#allocation16_spill]]  ;;  %s1162_s12 = smov %s892_s13 }
 0x2a4   : > { %s1159_s16 = sld [smem:[#allocation17_spill]] }
 0x2a5   : > { %s1160_s28 = sld [smem:[#allocation18_spill]] }
 0x2a6   : > { %s1161_s18 = sld [smem:[#allocation19_spill]] }
 0x2a7   : > { %s1163_s13 = smov %s1156_s14  ;;  %21 = sbr.rel (!%p19_p2) target bundleno = 11 (0xb), region = 109 }
 0x2a8   : > { %s1164_s14 = smov %s1157_s17 }
 0x2ab   : > { %s1165_s17 = smov %s1160_s28 }
 0x2ac   :  { %474 = vsyncpa [#allocation6], 1 }
 0x2ad   :  { %476 = vsyncpa [#allocation6 + $0x1], 1 }
 0x2ae   :  { %477 = vsyncpa [#allocation9], 1 }
 0x2af   :  { %479 = vsyncpa [#allocation9 + $0x1], 1 }
 0x2b0   :  { %480 = vsyncpa [#allocation7], 1 }
 0x2b1   :  { %482 = vsyncpa [#allocation7 + $0x1], 1 }

</bundles_post_ra>
